<compile_context>
chip_gen: v6e
topology: v6e:2x2x1
jax: 0.10.0
libtpu: 0.0.40
codegen_flags: <defaults>
</compile_context>

<pallas_src>
import functools

import jax
import jax.numpy as jnp
from jax.experimental import pallas as pl
from jax.experimental.pallas import tpu as pltpu


def _round_up(x, m):
    return ((x + m - 1) // m) * m


def critic_kernel(x_ref, w1_ref, b1_ref, w2_ref, b2_ref, w3_ref, b3_ref, out_ref):
    """One batch tile of the fused MLP.

    MXU: bf16 operands, f32 accumulation.  VPU: f32 bias + ReLU.
    Final 1-wide layer: VPU multiply + XLU cross-lane reduction, stored
    lane-dense into a [1, 1, tile_b] output block.
    """
    # Layer 1: [tb, D] @ [D, fc1]
    x = x_ref[...].astype(jnp.bfloat16)
    h1 = jnp.dot(x, w1_ref[...], preferred_element_type=jnp.float32)
    h1 = jnp.maximum(h1 + b1_ref[...], 0.0)

    # Layer 2: [tb, fc1] @ [fc1, fc2]
    h2 = jnp.dot(h1.astype(jnp.bfloat16), w2_ref[...],
                 preferred_element_type=jnp.float32)
    h2 = jnp.maximum(h2 + b2_ref[...], 0.0)

    # Layer 3 (out_features = 1): VPU mul + XLU lane reduce (avoids a <1%-column
    # MXU matmul).  Result placed on lanes -> lane-dense store.
    v = jnp.sum(h2 * w3_ref[...], axis=-1)          # [tb]
    v = v[None, :] + b3_ref[...]                    # [1, tb]
    out_ref[...] = v[None, :, :]                    # [1, 1, tb]


@functools.partial(jax.jit, static_argnames=("tile_b",))
def critic_forward(state, params, *, tile_b=512):
    """state: [B, input_dims] float32 -> value: [B, 1] float32."""
    w1, b1, w2, b2, w3, b3 = params
    B, D = state.shape
    fc1 = w1.shape[1]
    fc2 = w2.shape[1]

    # f32 master weights (training-friendly); cast MXU operands to bf16 here.
    w1_bf = w1.astype(jnp.bfloat16)
    w2_bf = w2.astype(jnp.bfloat16)

    # Batch tile: big enough to amortize per-step pipeline overhead, but capped
    # so num_tiles >= 2 whenever B > 128 (keeps both v7x TensorCores busy) and
    # rounded to 128 so the lane-dense output stores are unmasked.
    tile_b = _round_up(max(int(tile_b), 8), 8)
    eff_tile = min(tile_b, max(128, _round_up(pl.cdiv(B, 2), 128)))
    num_tiles = pl.cdiv(B, eff_tile)

    # Rough VMEM footprint (double-buffered x tile + f32 intermediates + bf16
    # copies + weights); keep headroom above it (v5e scoped default is 16 MiB).
    est = (2 * eff_tile * D * 4                      # x tile, double-buffered
           + 4 * eff_tile * max(fc1, fc2) * 4        # h1/h2 f32 + bf16 copies
           + 2 * (D * fc1 + fc1 * fc2) * 2)          # bf16 weights (2 bufs)
    vmem_limit = int(min(64 * 2**20, max(32 * 2**20, 2 * est)))

    full = lambda i: (0, 0)  # weights/biases: VMEM-resident across all tiles

    out = pl.pallas_call(
        critic_kernel,
        out_shape=jax.ShapeDtypeStruct((num_tiles, 1, eff_tile), jnp.float32),
        grid=(num_tiles,),
        in_specs=[
            pl.BlockSpec((eff_tile, D), lambda i: (i, 0)),  # state tile (ragged last)
            pl.BlockSpec((D, fc1), full),                   # w1 (bf16)
            pl.BlockSpec((1, fc1), full),                   # b1 (f32)
            pl.BlockSpec((fc1, fc2), full),                 # w2 (bf16)
            pl.BlockSpec((1, fc2), full),                   # b2 (f32)
            pl.BlockSpec((1, fc2), full),                   # w3 as [1, fc2] (f32)
            pl.BlockSpec((1, 1), full),                     # b3 (f32)
        ],
        out_specs=pl.BlockSpec((1, 1, eff_tile), lambda i: (i, 0, 0)),
        compiler_params=pltpu.CompilerParams(
            dimension_semantics=("parallel",),  # shard batch tiles across TCs
            vmem_limit_bytes=vmem_limit,
        ),
    )(state, w1_bf, b1, w2_bf, b2, w3, b3)

    # [num_tiles, 1, eff_tile] -> [B, 1]; drops garbage rows from the ragged
    # last input tile (safe: the MLP has no cross-row mixing).
    return out.reshape(num_tiles * eff_tile, 1)[:B]


def init_params(key, input_dims, fc1_dims=256, fc2_dims=256):
    """Deterministic synthetic init (uniform, PyTorch-Linear-like scaling).

    All parameters are stored as f32 master copies; bf16 casting for the MXU
    happens at call time inside critic_forward.
    """
    ks = jax.random.split(key, 6)

    def unif(k, shape, fan_in):
        bound = 1.0 / (fan_in ** 0.5)
        return jax.random.uniform(k, shape, jnp.float32, -bound, bound)

    # Weight matrices stored [in, out]; final layer stored as [1, fc2] for the
    # VPU+XLU path (equivalent to PyTorch's [1, fc2] weight of Linear(fc2, 1)).
    w1 = unif(ks[0], (input_dims, fc1_dims), input_dims)
    b1 = unif(ks[1], (1, fc1_dims), input_dims)
    w2 = unif(ks[2], (fc1_dims, fc2_dims), fc1_dims)
    b2 = unif(ks[3], (1, fc2_dims), fc1_dims)
    w3 = unif(ks[4], (1, fc2_dims), fc2_dims)
    b3 = unif(ks[5], (1, 1), fc2_dims)
    return (w1, b1, w2, b2, w3, b3)


if __name__ == "__main__":
    key = jax.random.PRNGKey(0)
    k_params, k_state = jax.random.split(key)

    B = 200          # not a tile multiple -> exercises the ragged last tile
    input_dims = 16  # observation dimension
    fc1_dims = 256
    fc2_dims = 256

    params = init_params(k_params, input_dims, fc1_dims, fc2_dims)
    state = jax.random.normal(k_state, (B, input_dims), jnp.float32)

    value = critic_forward(state, params)
    value = jax.block_until_ready(value)

    # Pure-f32 JAX reference. bf16 MXU operands give ~1e-2 relative error vs
    # the f32 reference, so the tolerance is loosened accordingly.
    w1, b1, w2, b2, w3, b3 = params
    h1 = jnp.maximum(state @ w1 + b1, 0.0)
    h2 = jnp.maximum(h1 @ w2 + b2, 0.0)
    ref = jnp.sum(h2 * w3, axis=-1, keepdims=True) + b3

    assert value.shape == (B, 1), value.shape
    assert jnp.allclose(value, ref, atol=3e-2, rtol=3e-2), (
        float(jnp.max(jnp.abs(value - ref))))

    print("KERNEL_OK")
</pallas_src>

<mosaic_0001>
module attributes {stable_mosaic.version = 11 : i64} {
  func.func @critic_kernel(%arg0: i32, %arg1: memref<128x16xf32, #tpu.memory_space<vmem>>, %arg2: memref<16x256xbf16, #tpu.memory_space<vmem>>, %arg3: memref<1x256xf32, #tpu.memory_space<vmem>>, %arg4: memref<256x256xbf16, #tpu.memory_space<vmem>>, %arg5: memref<1x256xf32, #tpu.memory_space<vmem>>, %arg6: memref<1x256xf32, #tpu.memory_space<vmem>>, %arg7: memref<1x1xf32, #tpu.memory_space<vmem>>, %arg8: memref<1x1x128xf32, #tpu.memory_space<vmem>>) attributes {dimension_semantics = [#tpu.dimension_semantics<parallel>], iteration_bounds = array<i64: 2>, scalar_prefetch = 0 : i64, scratch_operands = 0 : i64, tpu.core_type = #tpu.core_type<tc>, window_params = [{transform_indices = @transform_0, window_bounds = array<i64: 128, 16>}, {pipeline_mode = #tpu.pipeline_mode<synchronous>, transform_indices = @transform_1, window_bounds = array<i64: 16, 256>}, {pipeline_mode = #tpu.pipeline_mode<synchronous>, transform_indices = @transform_2, window_bounds = array<i64: 1, 256>}, {pipeline_mode = #tpu.pipeline_mode<synchronous>, transform_indices = @transform_3, window_bounds = array<i64: 256, 256>}, {pipeline_mode = #tpu.pipeline_mode<synchronous>, transform_indices = @transform_4, window_bounds = array<i64: 1, 256>}, {pipeline_mode = #tpu.pipeline_mode<synchronous>, transform_indices = @transform_5, window_bounds = array<i64: 1, 256>}, {pipeline_mode = #tpu.pipeline_mode<synchronous>, transform_indices = @transform_6, window_bounds = array<i64: 1, 1>}, {transform_indices = @transform_7, window_bounds = array<i64: 1, 1, 128>}]} {
    %c0 = arith.constant 0 : index
    %c0_0 = arith.constant 0 : index
    %0 = vector.load %arg1[%c0, %c0_0] : memref<128x16xf32, #tpu.memory_space<vmem>>, vector<128x16xf32>
    %1 = arith.truncf %0 : vector<128x16xf32> to vector<128x16xbf16>
    %c0_1 = arith.constant 0 : index
    %c0_2 = arith.constant 0 : index
    %2 = vector.load %arg2[%c0_1, %c0_2] : memref<16x256xbf16, #tpu.memory_space<vmem>>, vector<16x256xbf16>
    %cst = arith.constant dense<0.000000e+00> : vector<128x256xf32>
    %3 = tpu.matmul %1, %2, %cst {dimension_numbers = #tpu.dot_dimension_numbers<[1], [0], [0], [1], [0, 0, 1, 1], [], []>} : vector<128x16xbf16>, vector<16x256xbf16>, vector<128x256xf32> -> vector<128x256xf32>
    %c0_3 = arith.constant 0 : index
    %c0_4 = arith.constant 0 : index
    %4 = vector.load %arg3[%c0_3, %c0_4] : memref<1x256xf32, #tpu.memory_space<vmem>>, vector<1x256xf32>
    %5 = vector.broadcast %4 : vector<1x256xf32> to vector<128x256xf32>
    %6 = arith.addf %3, %5 : vector<128x256xf32>
    %cst_5 = arith.constant 0.000000e+00 : f32
    %7 = vector.broadcast %cst_5 : f32 to vector<128x256xf32>
    %8 = arith.maximumf %6, %7 : vector<128x256xf32>
    %9 = arith.truncf %8 : vector<128x256xf32> to vector<128x256xbf16>
    %c0_6 = arith.constant 0 : index
    %c0_7 = arith.constant 0 : index
    %10 = vector.load %arg4[%c0_6, %c0_7] : memref<256x256xbf16, #tpu.memory_space<vmem>>, vector<256x256xbf16>
    %cst_8 = arith.constant dense<0.000000e+00> : vector<128x256xf32>
    %11 = tpu.matmul %9, %10, %cst_8 {dimension_numbers = #tpu.dot_dimension_numbers<[1], [0], [0], [1], [0, 0, 1, 1], [], []>} : vector<128x256xbf16>, vector<256x256xbf16>, vector<128x256xf32> -> vector<128x256xf32>
    %c0_9 = arith.constant 0 : index
    %c0_10 = arith.constant 0 : index
    %12 = vector.load %arg5[%c0_9, %c0_10] : memref<1x256xf32, #tpu.memory_space<vmem>>, vector<1x256xf32>
    %13 = vector.broadcast %12 : vector<1x256xf32> to vector<128x256xf32>
    %14 = arith.addf %11, %13 : vector<128x256xf32>
    %cst_11 = arith.constant 0.000000e+00 : f32
    %15 = vector.broadcast %cst_11 : f32 to vector<128x256xf32>
    %16 = arith.maximumf %14, %15 : vector<128x256xf32>
    %c0_12 = arith.constant 0 : index
    %c0_13 = arith.constant 0 : index
    %17 = vector.load %arg6[%c0_12, %c0_13] : memref<1x256xf32, #tpu.memory_space<vmem>>, vector<1x256xf32>
    %18 = vector.broadcast %17 : vector<1x256xf32> to vector<128x256xf32>
    %19 = arith.mulf %16, %18 : vector<128x256xf32>
    %cst_14 = arith.constant dense<0.000000e+00> : vector<128xf32>
    %20 = vector.multi_reduction <add>, %19, %cst_14 [1] : vector<128x256xf32> to vector<128xf32>
    %21 = vector.shape_cast %20 : vector<128xf32> to vector<1x128xf32>
    %c0_15 = arith.constant 0 : index
    %c0_16 = arith.constant 0 : index
    %22 = vector.load %arg7[%c0_15, %c0_16] : memref<1x1xf32, #tpu.memory_space<vmem>>, vector<1x1xf32>
    %23 = vector.broadcast %22 : vector<1x1xf32> to vector<1x128xf32>
    %24 = arith.addf %21, %23 : vector<1x128xf32>
    %25 = vector.shape_cast %24 : vector<1x128xf32> to vector<1x1x128xf32>
    %c0_17 = arith.constant 0 : index
    %c0_18 = arith.constant 0 : index
    %c0_19 = arith.constant 0 : index
    %26 = vector.load %arg8[%c0_17, %c0_18, %c0_19] : memref<1x1x128xf32, #tpu.memory_space<vmem>>, vector<1x1x128xf32>
    tpu.vector_store %arg8[%c0_17, %c0_18, %c0_19], %25 {strides = array<i32>} : memref<1x1x128xf32, #tpu.memory_space<vmem>>, vector<1x1x128xf32>,
    return
  }
  func.func @transform_0(%arg0: i32) -> (i32, i32) {
    %c0_i32 = arith.constant 0 : i32
    %c0_i32_0 = arith.constant 0 : i32
    return %arg0, %c0_i32 : i32, i32
  }
  func.func @transform_1(%arg0: i32) -> (i32, i32) {
    %c0_i32 = arith.constant 0 : i32
    %c0_i32_0 = arith.constant 0 : i32
    %c0_i32_1 = arith.constant 0 : i32
    return %c0_i32, %c0_i32_0 : i32, i32
  }
  func.func @transform_2(%arg0: i32) -> (i32, i32) {
    %c0_i32 = arith.constant 0 : i32
    %c0_i32_0 = arith.constant 0 : i32
    %c0_i32_1 = arith.constant 0 : i32
    return %c0_i32, %c0_i32_0 : i32, i32
  }
  func.func @transform_3(%arg0: i32) -> (i32, i32) {
    %c0_i32 = arith.constant 0 : i32
    %c0_i32_0 = arith.constant 0 : i32
    %c0_i32_1 = arith.constant 0 : i32
    return %c0_i32, %c0_i32_0 : i32, i32
  }
  func.func @transform_4(%arg0: i32) -> (i32, i32) {
    %c0_i32 = arith.constant 0 : i32
    %c0_i32_0 = arith.constant 0 : i32
    %c0_i32_1 = arith.constant 0 : i32
    return %c0_i32, %c0_i32_0 : i32, i32
  }
  func.func @transform_5(%arg0: i32) -> (i32, i32) {
    %c0_i32 = arith.constant 0 : i32
    %c0_i32_0 = arith.constant 0 : i32
    %c0_i32_1 = arith.constant 0 : i32
    return %c0_i32, %c0_i32_0 : i32, i32
  }
  func.func @transform_6(%arg0: i32) -> (i32, i32) {
    %c0_i32 = arith.constant 0 : i32
    %c0_i32_0 = arith.constant 0 : i32
    %c0_i32_1 = arith.constant 0 : i32
    return %c0_i32, %c0_i32_0 : i32, i32
  }
  func.func @transform_7(%arg0: i32) -> (i32, i32, i32) {
    %c0_i32 = arith.constant 0 : i32
    %c0_i32_0 = arith.constant 0 : i32
    %c0_i32_1 = arith.constant 0 : i32
    return %arg0, %c0_i32, %c0_i32_0 : i32, i32, i32
  }
}

</mosaic_0001>

<bundles_post_ra>
// kernel: critic_forward.1
= control target key start
LH: loop header
LB: loop body
LE: loop exit
PB: predicated region body
PF: predicated region fallthrough
CT: control target
= control target key end

     0   :  { %s1905_s0 = inlined_call_operand.vmem [shape: f32[200,16], index: 0, kind: input, shape index: {}]   ;;  %s1906_s1 = inlined_call_operand.vmem [shape: bf16[16,256], index: 1, kind: input, shape index: {}]   ;;  %s1907_s2 = inlined_call_operand.vmem [shape: f32[1,256], index: 2, kind: input, shape index: {}]   ;;  %s1908_s3 = inlined_call_operand.vmem [shape: bf16[256,256], index: 3, kind: input, shape index: {}]   ;;  %s1909_s4 = inlined_call_operand.vmem [shape: f32[1,256], index: 4, kind: input, shape index: {}]   ;;  %s1910_s5 = inlined_call_operand.vmem [shape: f32[1,256], index: 5, kind: input, shape index: {}]   ;;  %s1911_s6 = inlined_call_operand.<no memory space> [shape: f32[1,1], index: 6, kind: input, shape index: {}]   ;;  %s1912_s7 = inlined_call_operand.hbm [shape: f32[2,1,128], index: 7, kind: output, shape index: {}]  }
   0x1   :  { %v12_v0 = vstv %s1911_s6 }
   0x2   :  { %13 = vst [vmem:[#allocation2] sm:$0x1] %v12_v0 }
   0x3   :  { %14 = vsyncpa [#allocation4], 0 }
   0x4   :  { %16 = vsyncpa [#allocation4 + $0x1], 0  ;;  %s1482_s26 = smov 0   ;;  %s1484_s27 = smov 0  }
   0x5   :  { %s1486_s28 = smov 0   ;;  %s1488_s29 = smov 0  }
   0x6 LB: > { %s1198_s6 = sadd.s32 4294967295, %s1435_s29   ;;  %s1199_s30 = sadd.s32 4294967294, %s1435_s29   ;;  %s1435_s29 = sphi %s1488_s29, %s1918_s29   ;;  %s1431_s28 = sphi %s1486_s28, %s1917_s28   ;;  %s1427_s27 = sphi %s1484_s27, %s1916_s27   ;;  %s1423_s26 = sphi %s1482_s26, %s1915_s26  }
   0x7   : > { %s1505_s8 = sadd.s32 1, %s1435_s29   ;;  %s181_s9 = sadd.s32 1, %s1431_s28 }
   0x8   : > { %s178_s10 = ssub.s32 %s1435_s29, %s1505_s8  ;;  %p191_p0 = scmp.ne.s32.totalorder %s1431_s28, %s1427_s27 }
   0x9   : > { %p179_p1 = scmp.eq.s32.totalorder %s178_s10, 0  ;;  %p192_p2 = scmp.eq.s32.totalorder %s1198_s6, 1 }
   0xa   : > { %p197_p3 = scmp.ne.s32.totalorder %s1427_s27, %s1423_s26  ;;  %p198_p4 = scmp.eq.s32.totalorder %s1199_s30, 1 }
   0xb   : > { %s1515_s11 = scalar_select %p179_p1, %s1431_s28, %s181_s9  }
   0xc   : > { %p1517_p5 = por %p192_p2, %p191_p0  ;;  %p1521_p6 = por %p198_p4, %p197_p3 }
   0xd   : > { %p1202_p7 = scmp.ge.s32.totalorder %s1435_s29, 1  ;;  %p251_p8 = scmp.lt.s32.totalorder %s1435_s29, 3 }
   0xf   : > { %p252_p9 = pnand %p1202_p7, %p251_p8 }
  0x10   : > { %s1530_s16 = sshll.u32 (!%p252_p9), %s1198_s6, 4  ;;  %s284_s22 = sand.u32 (!%p252_p9), 1, %s1427_s27  }
  0x11   : > { %255 = sbr.rel (%p252_p9) target bundleno = 671 (0x29f), region = 48  ;;  %p291_p10 = scmp.lt.s32.totalorder (!%p252_p9), %s1530_s16, 24 }
  0x12   : > { %s285_s23 = scalar_lea.vmem (!%p252_p9), [#allocation3], %s284_s22  ;;  %s1132_s30 = scalar_lea.sflag (!%p252_p9), [#allocation4], %s284_s22 }
  0x13   : > { %s1144_s24 = sshll.u32 (!%p252_p9), %s285_s23, 4  ;;  %s1438_s14 = smov (!%p252_p9), [#allocation3]   ;;  %s1145_s24 = int_to_ptr.vmem [resolvable:$true] %s1144_s24 }
  0x14   : > { %s1375_s9 = scalar_lea.vmem (!%p252_p9), %s1145_s24, 16  ;;  %s1379_s15 = sshll.u32 (!%p252_p9), %s1438_s14, 4  ;;  %s1380_s15 = int_to_ptr.vmem [resolvable:$false] %s1379_s15 }
  0x15   : > { %p1376_p11 = scmp.ne.s32.totalorder (!%p252_p9), %s1145_s24, %s1375_s9  ;;  %s1381_s17 = scalar_lea.vmem (!%p252_p9), %s1380_s15, 32 }
  0x16   : > { %v1324_v1 = vld [vmem:[%s1906_s1 + $0x4] ss:$8 sps:$4 sm:$0xff]   ;;  %v1326_v2 = vld [vmem:[%s1906_s1] ss:$8 sps:$4 sm:$0xff]   ;;  %v1437_v3 = vmov 0   ;;  %s292_s21 = scalar_select %p291_p10, %s1530_s16, 24  ;;  %v329_v60 = vlaneseq }
  0x17   : > { %406 = vmatprep.mubr.bf16.mxu0 %v1437_v3  ;;  %1322 = vset.pattern.permute.xlu1 %v1437_v3  ;;  %v1329_v4 = vld [vmem:[%s1908_s3 + $0x74] ss:$8 sps:$4 sm:$0xff]   ;;  %v1327_v5 = vld [vmem:[%s1908_s3 + $0x70] ss:$8 sps:$4 sm:$0xff]   ;;  %v1332_v6 = vld [vmem:[%s1908_s3 + $0x64] ss:$8 sps:$4 sm:$0xff]   ;;  %p1377_p12 = pnand %p1376_p11, %p1517_p5  ;;  %p1382_p0 = scmp.lt.s32.totalorder %s1145_s24, %s1380_s15 }
  0x18   : > { %388 = vmatprep.subr.bf16.mxu0 %v1324_v1  ;;  %1323 = vset.pattern.permute.xlu0 %v1437_v3  ;;  %s1204_s6 = sshll.u32 %s292_s21, 3  ;;  %vm349_vm0 = vcmask 130048   ;;  %v1330_v9 = vld [vmem:[%s1908_s3 + $0x60] ss:$8 sps:$4 sm:$0xff]   ;;  %v1335_v11 = vld [vmem:[%s1908_s3 + $0x54] ss:$8 sps:$4 sm:$0xff]   ;;  %p1383_p1 = scmp.lt.s32.totalorder %s1381_s17, %s1375_s9 }
  0x19   : > { %389 = vmatpush1.bf16.msra.mxu0 %v1326_v2  ;;  %1250 = vmatprep.subr.bf16.mxu1 %v1329_v4  ;;  %s1552_s10 = scalar_lea.vmem %s1905_s0, %s1204_s6  ;;  %v1333_v14 = vld [vmem:[%s1908_s3 + $0x50] ss:$8 sps:$4 sm:$0xff]   ;;  %v1338_v15 = vld [vmem:[%s1908_s3 + $0x44] ss:$8 sps:$4 sm:$0xff]   ;;  %v1336_v17 = vld [vmem:[%s1908_s3 + $0x40] ss:$8 sps:$4 sm:$0xff]   ;;  %s1868_s6 = scalar_lea.hbm %s1912_s7, %s1530_s16 }
  0x1a   : > { %739 = vmatprep.subr.bf16.mxu0 %v1329_v4  ;;  %1266 = vmatpush1.bf16.msra.mxu1 %v1327_v5  ;;  %v301_v7 = vld [vmem:[%s1552_s10] sm:$0xff]  ;;  %v302_v8 = vld [vmem:[%s1552_s10 + $0x8] sm:$0xff]  ;;  %v303_v12 = vld [vmem:[%s1552_s10 + $0x10] sm:$0xff]  ;;  %v1673_v61 = vshrl.u32 %v329_v60, 7  ;;  %vm1029_vm1 = vcmask 130112   ;;  %vm1036_vm2 = vcmask 195712   ;;  %p1378_p13 = pneg %p1377_p12  ;;  %p1384_p2 = por %p1383_p1, %p1382_p0 }
  0x1b   : > { %1251 = vmatprep.subr.bf16.mxu1 %v1332_v6  ;;  %v317_v10 = vpack.c.bf16 %v302_v8, %v301_v7  ;;  %v304_v13 = vld [vmem:[%s1552_s10 + $0x18] sm:$0xff]  ;;  %v305_v19 = vld [vmem:[%s1552_s10 + $0x20] sm:$0xff]  ;;  %v306_v20 = vld [vmem:[%s1552_s10 + $0x28] sm:$0xff]  ;;  %vm1043_vm3 = vcmask 261312   ;;  %vm1050_vm4 = vcmask 326912   ;;  %vm1057_vm5 = vcmask 392512  }
  0x1c   : > { %v318_v16 = vpack.c.bf16 %v304_v13, %v303_v12  ;;  %v1341_v18 = vld [vmem:[%s1908_s3 + $0x34] ss:$8 sps:$4 sm:$0xff]   ;;  %v1339_v21 = vld [vmem:[%s1908_s3 + $0x30] ss:$8 sps:$4 sm:$0xff]   ;;  %v1344_v22 = vld [vmem:[%s1908_s3 + $0x24] ss:$8 sps:$4 sm:$0xff]   ;;  %v319_v23 = vpack.c.bf16 %v306_v20, %v305_v19  ;;  %p1385_p3 = pnand %p1384_p2, %p1378_p13 }
  0x1d   : > { %1207 = vmatmul.mubr.msk.bf16.vlgmr.msra.gmra.mxu0 %vm349_vm0, %v317_v10  ;;  %v1342_v24 = vld [vmem:[%s1908_s3 + $0x20] ss:$8 sps:$4 sm:$0xff]   ;;  %v1347_v25 = vld [vmem:[%s1908_s3 + $0x14] ss:$8 sps:$4 sm:$0xff]   ;;  %v1345_v28 = vld [vmem:[%s1908_s3 + $0x10] ss:$8 sps:$4 sm:$0xff]  }
  0x1e   : > { %1267 = vmatpush1.bf16.msra.mxu1 %v1330_v9  ;;  %416 = vmatprep.mubr.bf16.mxu0 %v1437_v3  ;;  %v307_v26 = vld [vmem:[%s1552_s10 + $0x30] sm:$0xff]  ;;  %v308_v27 = vld [vmem:[%s1552_s10 + $0x38] sm:$0xff]  ;;  %v1350_v29 = vld [vmem:[%s1908_s3 + $0x4] ss:$8 sps:$4 sm:$0xff]   ;;  %v1676_v62 = vsub.s32 1, %v1673_v61  ;;  %v1679_v63 = vsub.s32 0, %v1673_v61 }
  0x1f   : > { %1252 = vmatprep.subr.bf16.mxu1 %v1335_v11  ;;  %740 = vmatpush1.bf16.msra.mxu0 %v1327_v5  ;;  %v320_v30 = vpack.c.bf16 %v308_v27, %v307_v26  ;;  %v1348_v31 = vld [vmem:[%s1908_s3] ss:$8 sps:$4 sm:$0xff]   ;;  %v1353_v32 = vld [vmem:[%s1908_s3 + $0xf4] ss:$8 sps:$4 sm:$0xff]   ;;  %v1351_v35 = vld [vmem:[%s1908_s3 + $0xf0] ss:$8 sps:$4 sm:$0xff]  }
  0x20   : > { %741 = vmatprep.subr.bf16.mxu0 %v1332_v6  ;;  %v309_v33 = vld [vmem:[%s1552_s10 + $0x40] sm:$0xff]  ;;  %v310_v34 = vld [vmem:[%s1552_s10 + $0x48] sm:$0xff]  ;;  %v1359_v39 = vld [vmem:[%s1908_s3 + $0xd4] ss:$8 sps:$4 sm:$0xff]   ;;  %vm1064_vm6 = vcmask 458112   ;;  %vm1071_vm7 = vcmask 523712  }
  0x21   : > { %v1356_v36 = vld [vmem:[%s1908_s3 + $0xe4] ss:$8 sps:$4 sm:$0xff]   ;;  %v321_v37 = vpack.c.bf16 %v310_v34, %v309_v33  ;;  %v1354_v38 = vld [vmem:[%s1908_s3 + $0xe0] ss:$8 sps:$4 sm:$0xff]   ;;  %v311_v40 = vld [vmem:[%s1552_s10 + $0x50] sm:$0xff]  ;;  %vm1078_vm8 = vcmask 589312  }
  0x22   : > { %1268 = vmatpush1.bf16.msra.mxu1 %v1333_v14  ;;  %v312_v41 = vld [vmem:[%s1552_s10 + $0x58] sm:$0xff]  ;;  %v1362_v43 = vld [vmem:[%s1908_s3 + $0xc4] ss:$8 sps:$4 sm:$0xff]   ;;  %v1360_v45 = vld [vmem:[%s1908_s3 + $0xc0] ss:$8 sps:$4 sm:$0xff]   ;;  %vm1085_vm9 = vcmask 654912  }
  0x23   : > { %1253 = vmatprep.subr.bf16.mxu1 %v1338_v15  ;;  %742 = vmatpush1.bf16.msra.mxu0 %v1330_v9  ;;  %v1357_v42 = vld [vmem:[%s1908_s3 + $0xd0] ss:$8 sps:$4 sm:$0xff]   ;;  %v322_v44 = vpack.c.bf16 %v312_v41, %v311_v40  ;;  %v1365_v46 = vld [vmem:[%s1908_s3 + $0xb4] ss:$8 sps:$4 sm:$0xff]   ;;  %v313_v47 = vld [vmem:[%s1552_s10 + $0x60] sm:$0xff]  ;;  %vm1092_vm10 = vcmask 720512  }
  0x24   : > { %743 = vmatprep.subr.bf16.mxu0 %v1335_v11  ;;  %v314_v48 = vld [vmem:[%s1552_s10 + $0x68] sm:$0xff]  ;;  %v1363_v49 = vld [vmem:[%s1908_s3 + $0xb0] ss:$8 sps:$4 sm:$0xff]   ;;  %v1371_v56 = vld [vmem:[%s1908_s3 + $0x94] ss:$8 sps:$4 sm:$0xff]   ;;  %vm1099_vm11 = vcmask 786112  }
  0x25   : > { %1208 = vmatmul.mubr.msk.bf16.gmra.mxu0 %vm349_vm0, %v318_v16  ;;  %v323_v50 = vpack.c.bf16 %v314_v48, %v313_v47  ;;  %v315_v51 = vld [vmem:[%s1552_s10 + $0x70] sm:$0xff]  ;;  %v316_v52 = vld [vmem:[%s1552_s10 + $0x78] sm:$0xff]  ;;  %v1368_v54 = vld [vmem:[%s1908_s3 + $0xa4] ss:$8 sps:$4 sm:$0xff]   ;;  %vm1106_vm12 = vcmask 851712   ;;  %vm1113_vm13 = vcmask 917312  }
  0x26   : > { %1269 = vmatpush1.bf16.msra.mxu1 %v1336_v17  ;;  %426 = vmatprep.mubr.bf16.mxu0 %v1437_v3  ;;  %v324_v53 = vpack.c.bf16 %v316_v52, %v315_v51  ;;  %v1366_v55 = vld [vmem:[%s1908_s3 + $0xa0] ss:$8 sps:$4 sm:$0xff]   ;;  %v1369_v57 = vld [vmem:[%s1908_s3 + $0x90] ss:$8 sps:$4 sm:$0xff]   ;;  %v1374_v58 = vld [vmem:[%s1908_s3 + $0x84] ss:$8 sps:$4 sm:$0xff]  }
  0x27   : > { %1254 = vmatprep.subr.bf16.mxu1 %v1341_v18  ;;  %744 = vmatpush1.bf16.msra.mxu0 %v1333_v14  ;;  %v1372_v59 = vld [vmem:[%s1908_s3 + $0x80] ss:$8 sps:$4 sm:$0xff]   ;;  %vm1120_vm14 = vcmask 982912   ;;  %vm1127_vm15 = vcmask 1048512  }
  0x28   : > { %745 = vmatprep.subr.bf16.mxu0 %v1338_v15  ;;  %v327_v0 = vld [vmem:[%s1907_s2] sm:$0x3] }
  0x29   : > { %v1685_v2 = vrot.slane %v327_v0, %v1676_v62 }
  0x2a   : > { %1270 = vmatpush1.bf16.msra.mxu1 %v1339_v21 }
  0x2b   : > { %1255 = vmatprep.subr.bf16.mxu1 %v1344_v22  ;;  %746 = vmatpush1.bf16.msra.mxu0 %v1336_v17 }
  0x2c   : > { %747 = vmatprep.subr.bf16.mxu0 %v1341_v18 }
  0x2d   : > { %1209 = vmatmul.mubr.msk.bf16.gmra.mxu0 %vm349_vm0, %v319_v23 }
  0x2e   : > { %1271 = vmatpush1.bf16.msra.mxu1 %v1342_v24  ;;  %436 = vmatprep.mubr.bf16.mxu0 %v1437_v3 }
  0x2f   : > { %1256 = vmatprep.subr.bf16.mxu1 %v1347_v25  ;;  %748 = vmatpush1.bf16.msra.mxu0 %v1339_v21 }
  0x30   : > { %749 = vmatprep.subr.bf16.mxu0 %v1344_v22 }
  0x32   : > { %1272 = vmatpush1.bf16.msra.mxu1 %v1345_v28 }
  0x33   : > { %1257 = vmatprep.subr.bf16.mxu1 %v1350_v29  ;;  %750 = vmatpush1.bf16.msra.mxu0 %v1342_v24 }
  0x34   : > { %751 = vmatprep.subr.bf16.mxu0 %v1347_v25 }
  0x35   : > { %1210 = vmatmul.mubr.msk.bf16.gmra.mxu0 %vm349_vm0, %v320_v30 }
  0x36   : > { %1273 = vmatpush1.bf16.msra.mxu1 %v1348_v31  ;;  %446 = vmatprep.mubr.bf16.mxu0 %v1437_v3 }
  0x37   : > { %1258 = vmatprep.subr.bf16.mxu1 %v1353_v32  ;;  %752 = vmatpush1.bf16.msra.mxu0 %v1345_v28 }
  0x38   : > { %753 = vmatprep.subr.bf16.mxu0 %v1350_v29 }
  0x3a   : > { %1274 = vmatpush2.bf16.msra.mxu1 %v1351_v35 }
  0x3b   : > { %1259 = vmatprep.subr.bf16.mxu1 %v1356_v36  ;;  %754 = vmatpush1.bf16.msra.mxu0 %v1348_v31 }
  0x3c   : > { %755 = vmatprep.subr.bf16.mxu0 %v1353_v32 }
  0x3d   : > { %1211 = vmatmul.mubr.msk.bf16.gmra.mxu0 %vm349_vm0, %v321_v37 }
  0x3e   : > { %1275 = vmatpush2.bf16.msra.mxu1 %v1354_v38  ;;  %456 = vmatprep.mubr.bf16.mxu0 %v1437_v3 }
  0x3f   : > { %1260 = vmatprep.subr.bf16.mxu1 %v1359_v39  ;;  %756 = vmatpush2.bf16.msra.mxu0 %v1351_v35 }
  0x40   : > { %757 = vmatprep.subr.bf16.mxu0 %v1356_v36 }
  0x42   : > { %1276 = vmatpush2.bf16.msra.mxu1 %v1357_v42 }
  0x43   : > { %1261 = vmatprep.subr.bf16.mxu1 %v1362_v43  ;;  %758 = vmatpush2.bf16.msra.mxu0 %v1354_v38 }
  0x44   : > { %759 = vmatprep.subr.bf16.mxu0 %v1359_v39 }
  0x45   : > { %1212 = vmatmul.mubr.msk.bf16.gmra.mxu0 %vm349_vm0, %v322_v44 }
  0x46   : > { %1277 = vmatpush2.bf16.msra.mxu1 %v1360_v45  ;;  %466 = vmatprep.mubr.bf16.mxu0 %v1437_v3 }
  0x47   : > { %1262 = vmatprep.subr.bf16.mxu1 %v1365_v46  ;;  %760 = vmatpush2.bf16.msra.mxu0 %v1357_v42 }
  0x48   : > { %761 = vmatprep.subr.bf16.mxu0 %v1362_v43 }
  0x4a   : > { %1278 = vmatpush2.bf16.msra.mxu1 %v1363_v49 }
  0x4b   : > { %762 = vmatpush2.bf16.msra.mxu0 %v1360_v45  ;;  %1263 = vmatprep.subr.bf16.mxu1 %v1368_v54 }
  0x4c   : > { %763 = vmatprep.subr.bf16.mxu0 %v1365_v46 }
  0x4d   : > { %1213 = vmatmul.mubr.msk.bf16.gmra.mxu0 %vm349_vm0, %v323_v50 }
  0x4e   : > { %476 = vmatprep.mubr.bf16.mxu0 %v1437_v3  ;;  %1279 = vmatpush2.bf16.msra.mxu1 %v1366_v55  ;;  %v1688_v3 = vrot.slane %v327_v0, %v1679_v63 }
  0x4f   : > { %764 = vmatpush2.bf16.msra.mxu0 %v1363_v49  ;;  %1264 = vmatprep.subr.bf16.mxu1 %v1371_v56 }
  0x50   : > { %765 = vmatprep.subr.bf16.mxu0 %v1368_v54 }
  0x52   : > { %1280 = vmatpush2.bf16.msra.mxu1 %v1369_v57 }
  0x53   : > { %766 = vmatpush2.bf16.msra.mxu0 %v1366_v55  ;;  %1265 = vmatprep.subr.bf16.mxu1 %v1374_v58 }
  0x54   : > { %767 = vmatprep.subr.bf16.mxu0 %v1371_v56 }
  0x55   : > { %1214 = vmatmul.mubr.msk.bf16.gmra.mxu0 %vm349_vm0, %v324_v53 }
  0x56   : > { %1281 = vmatpush2.bf16.msra.mxu1 %v1372_v59 }
  0x57   : > { %768 = vmatpush2.bf16.msra.mxu0 %v1369_v57 }
  0x58   : > { %769 = vmatprep.subr.bf16.mxu0 %v1374_v58 }
  0x5b   : > { %770 = vmatpush2.bf16.msra.mxu0 %v1372_v59 }
  0xdd   : > { %v408_v1 = vpop.f32.mrf.mxu0 }
  0xde   : > { %v409_v8 = vadd.f32 %v408_v1, %v1688_v3 }
  0xdf   : > { %v410_v4 = vpop.f32.mrf.mxu0 }
  0xe0   : > { %v411_v6 = vadd.f32 %v410_v4, %v1685_v2  ;;  %v487_v15 = vmax.f32 %v409_v8, 0.0 }
  0xe1   : > { %v412_v5 = vpop.f32.mrf.mxu0 }
  0xe2   : > { %v413_v7 = vadd.f32 %v412_v5, %v1688_v3  ;;  %v488_v13 = vmax.f32 %v411_v6, 0.0 }
  0xe3   : > { %v414_v9 = vpop.f32.mrf.mxu0 }
  0xe4   : > { %v415_v10 = vadd.f32 %v414_v9, %v1685_v2  ;;  %v489_v11 = vmax.f32 %v413_v7, 0.0 }
  0xe5   : > { %v418_v12 = vpop.f32.mrf.mxu0 }
  0xe6   : > { %v490_v14 = vmax.f32 %v415_v10, 0.0  ;;  %v519_v18 = vpack.c.bf16 %v489_v11, %v487_v15  ;;  %v419_v22 = vadd.f32 %v418_v12, %v1688_v3 }
  0xe7   : > { %v420_v16 = vpop.f32.mrf.mxu0 }
  0xe8   : > { %v520_v17 = vpack.c.bf16 %v490_v14, %v488_v13  ;;  %v421_v20 = vadd.f32 %v420_v16, %v1685_v2  ;;  %v491_v29 = vmax.f32 %v419_v22, 0.0 }
  0xe9   : > { %v422_v19 = vpop.f32.mrf.mxu0 }
  0xea   : > { %v423_v21 = vadd.f32 %v422_v19, %v1688_v3  ;;  %771 = vmatprep.mubr.bf16.mxu0 %v520_v17  ;;  %v492_v27 = vmax.f32 %v421_v20, 0.0 }
  0xeb   : > { %v424_v23 = vpop.f32.mrf.mxu0  ;;  %772 = vmatmul.mubr.bf16.vlgmr.msra.gmra.mxu0 %v519_v18 }
  0xec   : > { %v425_v24 = vadd.f32 %v424_v23, %v1685_v2  ;;  %v493_v25 = vmax.f32 %v423_v21, 0.0 }
  0xed   : > { %v428_v26 = vpop.f32.mrf.mxu0 }
  0xee   : > { %v494_v28 = vmax.f32 %v425_v24, 0.0  ;;  %v521_v32 = vpack.c.bf16 %v493_v25, %v491_v29  ;;  %v429_v36 = vadd.f32 %v428_v26, %v1688_v3 }
  0xef   : > { %v430_v30 = vpop.f32.mrf.mxu0 }
  0xf0   : > { %v522_v31 = vpack.c.bf16 %v494_v28, %v492_v27  ;;  %v431_v34 = vadd.f32 %v430_v30, %v1685_v2  ;;  %v495_v43 = vmax.f32 %v429_v36, 0.0 }
  0xf1   : > { %v432_v33 = vpop.f32.mrf.mxu0 }
  0xf2   : > { %v433_v35 = vadd.f32 %v432_v33, %v1688_v3  ;;  %781 = vmatprep.mubr.bf16.mxu0 %v522_v31  ;;  %v496_v41 = vmax.f32 %v431_v34, 0.0 }
  0xf3   : > { %v434_v37 = vpop.f32.mrf.mxu0  ;;  %782 = vmatmul.mubr.bf16.gmra.mxu0 %v521_v32 }
  0xf4   : > { %v435_v38 = vadd.f32 %v434_v37, %v1685_v2  ;;  %v497_v39 = vmax.f32 %v433_v35, 0.0 }
  0xf5   : > { %v438_v40 = vpop.f32.mrf.mxu0 }
  0xf6   : > { %v498_v42 = vmax.f32 %v435_v38, 0.0  ;;  %v439_v44 = vadd.f32 %v438_v40, %v1688_v3  ;;  %v523_v48 = vpack.c.bf16 %v497_v39, %v495_v43 }
  0xf7   : > { %v440_v45 = vpop.f32.mrf.mxu0 }
  0xf8   : > { %v524_v46 = vpack.c.bf16 %v498_v42, %v496_v41  ;;  %v441_v47 = vadd.f32 %v440_v45, %v1685_v2  ;;  %v499_v51 = vmax.f32 %v439_v44, 0.0 }
  0xf9   : > { %v442_v49 = vpop.f32.mrf.mxu0 }
  0xfa   : > { %v443_v50 = vadd.f32 %v442_v49, %v1688_v3  ;;  %791 = vmatprep.mubr.bf16.mxu0 %v524_v46  ;;  %v500_v53 = vmax.f32 %v441_v47, 0.0 }
  0xfb   : > { %v444_v52 = vpop.f32.mrf.mxu0  ;;  %792 = vmatmul.mubr.bf16.gmra.mxu0 %v523_v48 }
  0xfc   : > { %v501_v54 = vmax.f32 %v443_v50, 0.0  ;;  %v445_v55 = vadd.f32 %v444_v52, %v1685_v2 }
  0xfd   : > { %v448_v56 = vpop.f32.mrf.mxu0 }
  0xfe   : > { %v502_v57 = vmax.f32 %v445_v55, 0.0  ;;  %v525_v58 = vpack.c.bf16 %v501_v54, %v499_v51  ;;  %v449_v59 = vadd.f32 %v448_v56, %v1688_v3 }
  0xff   : > { %v450_v0 = vpop.f32.mrf.mxu0 }
 0x100   : > { %v451_v1 = vadd.f32 %v450_v0, %v1685_v2  ;;  %v526_v4 = vpack.c.bf16 %v502_v57, %v500_v53  ;;  %v503_v7 = vmax.f32 %v449_v59, 0.0  ;;  %v567_v57 = vld [vmem:[%s1909_s4] sm:$0x3] }
 0x101   : > { %v452_v5 = vpop.f32.mrf.mxu0 }
 0x102   : > { %v453_v6 = vadd.f32 %v452_v5, %v1688_v3  ;;  %801 = vmatprep.mubr.bf16.mxu1 %v526_v4  ;;  %v504_v9 = vmax.f32 %v451_v1, 0.0 }
 0x103   : > { %v454_v8 = vpop.f32.mrf.mxu0  ;;  %802 = vmatmul.mubr.bf16.vlgmr.msra.gmra.mxu1 %v525_v58  ;;  %v1726_v58 = vrot.slane %v567_v57, %v1679_v63 }
 0x104   : > { %v505_v10 = vmax.f32 %v453_v6, 0.0  ;;  %v455_v11 = vadd.f32 %v454_v8, %v1685_v2 }
 0x105   : > { %v458_v12 = vpop.f32.mrf.mxu0 }
 0x106   : > { %v506_v13 = vmax.f32 %v455_v11, 0.0  ;;  %v527_v14 = vpack.c.bf16 %v505_v10, %v503_v7  ;;  %v459_v15 = vadd.f32 %v458_v12, %v1688_v3 }
 0x107   : > { %v460_v16 = vpop.f32.mrf.mxu0 }
 0x108   : > { %v528_v17 = vpack.c.bf16 %v506_v13, %v504_v9  ;;  %v461_v18 = vadd.f32 %v460_v16, %v1685_v2  ;;  %v507_v21 = vmax.f32 %v459_v15, 0.0 }
 0x109   : > { %v462_v19 = vpop.f32.mrf.mxu0 }
 0x10a   : > { %v463_v20 = vadd.f32 %v462_v19, %v1688_v3  ;;  %811 = vmatprep.mubr.bf16.mxu1 %v528_v17  ;;  %v508_v23 = vmax.f32 %v461_v18, 0.0 }
 0x10b   : > { %v464_v22 = vpop.f32.mrf.mxu0  ;;  %812 = vmatmul.mubr.bf16.gmra.mxu1 %v527_v14 }
 0x10c   : > { %v509_v24 = vmax.f32 %v463_v20, 0.0  ;;  %v465_v25 = vadd.f32 %v464_v22, %v1685_v2 }
 0x10d   : > { %v468_v26 = vpop.f32.mrf.mxu0 }
 0x10e   : > { %v510_v27 = vmax.f32 %v465_v25, 0.0  ;;  %v529_v28 = vpack.c.bf16 %v509_v24, %v507_v21  ;;  %v469_v29 = vadd.f32 %v468_v26, %v1688_v3 }
 0x10f   : > { %v470_v30 = vpop.f32.mrf.mxu0 }
 0x110   : > { %v530_v31 = vpack.c.bf16 %v510_v27, %v508_v23  ;;  %v471_v32 = vadd.f32 %v470_v30, %v1685_v2  ;;  %v511_v35 = vmax.f32 %v469_v29, 0.0 }
 0x111   : > { %v472_v33 = vpop.f32.mrf.mxu0 }
 0x112   : > { %v473_v34 = vadd.f32 %v472_v33, %v1688_v3  ;;  %821 = vmatprep.mubr.bf16.mxu1 %v530_v31  ;;  %v512_v37 = vmax.f32 %v471_v32, 0.0 }
 0x113   : > { %v474_v36 = vpop.f32.mrf.mxu0  ;;  %822 = vmatmul.mubr.bf16.gmra.mxu1 %v529_v28 }
 0x114   : > { %v513_v38 = vmax.f32 %v473_v34, 0.0  ;;  %v475_v39 = vadd.f32 %v474_v36, %v1685_v2 }
 0x115   : > { %v478_v40 = vpop.f32.mrf.mxu0 }
 0x116   : > { %v514_v41 = vmax.f32 %v475_v39, 0.0  ;;  %v531_v42 = vpack.c.bf16 %v513_v38, %v511_v35  ;;  %v479_v43 = vadd.f32 %v478_v40, %v1688_v3 }
 0x117   : > { %v480_v44 = vpop.f32.mrf.mxu0 }
 0x118   : > { %v532_v45 = vpack.c.bf16 %v514_v41, %v512_v37  ;;  %v481_v46 = vadd.f32 %v480_v44, %v1685_v2  ;;  %v515_v49 = vmax.f32 %v479_v43, 0.0 }
 0x119   : > { %v482_v47 = vpop.f32.mrf.mxu0 }
 0x11a   : > { %v483_v48 = vadd.f32 %v482_v47, %v1688_v3  ;;  %831 = vmatprep.mubr.bf16.mxu1 %v532_v45  ;;  %v516_v51 = vmax.f32 %v481_v46, 0.0  ;;  %v1729_v3 = vrot.slane %v567_v57, %v1676_v62 }
 0x11b   : > { %v484_v50 = vpop.f32.mrf.mxu0  ;;  %832 = vmatmul.mubr.bf16.gmra.mxu1 %v531_v42 }
 0x11c   : > { %v517_v52 = vmax.f32 %v483_v48, 0.0  ;;  %v485_v53 = vadd.f32 %v484_v50, %v1685_v2  ;;  %v884_v2 = vld [vmem:[%s1910_s5] sm:$0x3] }
 0x11d   : > { %v1737_v6 = vrot.slane %v884_v2, %v1679_v63  ;;  %v1740_v7 = vrot.slane %v884_v2, %v1676_v62 }
 0x11e   : > { %v518_v54 = vmax.f32 %v485_v53, 0.0  ;;  %v533_v55 = vpack.c.bf16 %v517_v52, %v515_v49 }
 0x120   : > { %v534_v56 = vpack.c.bf16 %v518_v54, %v516_v51 }
 0x122   : > { %841 = vmatprep.mubr.bf16.mxu1 %v534_v56 }
 0x123   : > { %842 = vmatmul.mubr.bf16.gmra.mxu1 %v533_v55 }
 0x1ab   : > { %v773_v59 = vpop.f32.mrf.mxu0 }
 0x1ac   : > { %v774_v0 = vadd.f32 %v773_v59, %v1726_v58 }
 0x1ad   : > { %v775_v1 = vpop.f32.mrf.mxu0 }
 0x1ae   : > { %v852_v4 = vmax.f32 %v774_v0, 0.0  ;;  %v776_v5 = vadd.f32 %v775_v1, %v1729_v3 }
 0x1af   : > { %v777_v8 = vpop.f32.mrf.mxu0 }
 0x1b0   : > { %v853_v9 = vmax.f32 %v776_v5, 0.0  ;;  %v778_v10 = vadd.f32 %v777_v8, %v1726_v58  ;;  %v896_v14 = vmul.f32 %v1737_v6, %v852_v4 }
 0x1b1   : > { %v779_v11 = vpop.f32.mrf.mxu0 }
 0x1b2   : > { %v854_v12 = vmax.f32 %v778_v10, 0.0  ;;  %v780_v13 = vadd.f32 %v779_v11, %v1729_v3  ;;  %v897_v15 = vmul.f32 %v1740_v7, %v853_v9 }
 0x1b3   : > { %v783_v16 = vpop.f32.mrf.mxu0 }
 0x1b4   : > { %v855_v17 = vmax.f32 %v780_v13, 0.0  ;;  %v784_v18 = vadd.f32 %v783_v16, %v1726_v58  ;;  %v928_v19 = vadd.f32 %v897_v15, %v896_v14  ;;  %v898_v62 = vmul.f32 %v1737_v6, %v854_v12 }
 0x1b5   : > { %v785_v20 = vpop.f32.mrf.mxu0 }
 0x1b6   : > { %v899_v21 = vmul.f32 %v1740_v7, %v855_v17  ;;  %v856_v22 = vmax.f32 %v784_v18, 0.0  ;;  %v786_v23 = vadd.f32 %v785_v20, %v1729_v3  ;;  %929 = vadd.xlane.f32.xlu0 %v928_v19 }
 0x1b7   : > { %v787_v24 = vpop.f32.mrf.mxu0 }
 0x1b8   : > { %v857_v25 = vmax.f32 %v786_v23, 0.0  ;;  %v788_v26 = vadd.f32 %v787_v24, %v1726_v58  ;;  %v931_v27 = vadd.f32 %v899_v21, %v898_v62  ;;  %v900_v31 = vmul.f32 %v1737_v6, %v856_v22 }
 0x1b9   : > { %v789_v28 = vpop.f32.mrf.mxu0 }
 0x1ba   : > { %v858_v29 = vmax.f32 %v788_v26, 0.0  ;;  %v790_v30 = vadd.f32 %v789_v28, %v1729_v3  ;;  %932 = vadd.xlane.f32.xlu0 %v931_v27  ;;  %v901_v32 = vmul.f32 %v1740_v7, %v857_v25 }
 0x1bb   : > { %v793_v33 = vpop.f32.mrf.mxu0 }
 0x1bc   : > { %v859_v34 = vmax.f32 %v790_v30, 0.0  ;;  %v794_v35 = vadd.f32 %v793_v33, %v1726_v58  ;;  %v934_v36 = vadd.f32 %v901_v32, %v900_v31  ;;  %v902_v38 = vmul.f32 %v1737_v6, %v858_v29 }
 0x1bd   : > { %v795_v37 = vpop.f32.mrf.mxu0 }
 0x1be   : > { %v903_v39 = vmul.f32 %v1740_v7, %v859_v34  ;;  %v860_v40 = vmax.f32 %v794_v35, 0.0  ;;  %v796_v41 = vadd.f32 %v795_v37, %v1729_v3  ;;  %935 = vadd.xlane.f32.xlu1 %v934_v36 }
 0x1bf   : > { %v797_v42 = vpop.f32.mrf.mxu0 }
 0x1c0   : > { %v861_v43 = vmax.f32 %v796_v41, 0.0  ;;  %v798_v44 = vadd.f32 %v797_v42, %v1726_v58  ;;  %v937_v45 = vadd.f32 %v903_v39, %v902_v38  ;;  %v904_v47 = vmul.f32 %v1737_v6, %v860_v40 }
 0x1c1   : > { %v799_v46 = vpop.f32.mrf.mxu0 }
 0x1c2   : > { %v905_v48 = vmul.f32 %v1740_v7, %v861_v43  ;;  %v862_v49 = vmax.f32 %v798_v44, 0.0  ;;  %v800_v50 = vadd.f32 %v799_v46, %v1729_v3  ;;  %938 = vadd.xlane.f32.xlu1 %v937_v45  ;;  %v976_v44 = vld [vmem:[#allocation2] sm:$0x1] }
 0x1c3   : > { %v803_v51 = vpop.f32.mrf.mxu1 }
 0x1c4   : > { %v863_v52 = vmax.f32 %v800_v50, 0.0  ;;  %v804_v53 = vadd.f32 %v803_v51, %v1726_v58  ;;  %v940_v54 = vadd.f32 %v905_v48, %v904_v47  ;;  %v906_v56 = vmul.f32 %v1737_v6, %v862_v49 }
 0x1c5   : > { %v805_v55 = vpop.f32.mrf.mxu1 }
 0x1c6   : > { %v907_v57 = vmul.f32 %v1740_v7, %v863_v52  ;;  %v864_v59 = vmax.f32 %v804_v53, 0.0  ;;  %v806_v2 = vadd.f32 %v805_v55, %v1729_v3  ;;  %941 = vadd.xlane.f32.xlu0 %v940_v54 }
 0x1c7   : > { %v807_v0 = vpop.f32.mrf.mxu1 }
 0x1c8   : > { %v908_v1 = vmul.f32 %v1737_v6, %v864_v59  ;;  %v865_v4 = vmax.f32 %v806_v2, 0.0  ;;  %v808_v5 = vadd.f32 %v807_v0, %v1726_v58  ;;  %v943_v8 = vadd.f32 %v907_v57, %v906_v56 }
 0x1c9   : > { %v809_v9 = vpop.f32.mrf.mxu1 }
 0x1ca   : > { %v909_v10 = vmul.f32 %v1740_v7, %v865_v4  ;;  %v866_v11 = vmax.f32 %v808_v5, 0.0  ;;  %v810_v12 = vadd.f32 %v809_v9, %v1729_v3  ;;  %944 = vadd.xlane.f32.xlu1 %v943_v8 }
 0x1cb   : > { %v813_v13 = vpop.f32.mrf.mxu1 }
 0x1cc   : > { %v910_v14 = vmul.f32 %v1737_v6, %v866_v11  ;;  %v867_v15 = vmax.f32 %v810_v12, 0.0  ;;  %v814_v16 = vadd.f32 %v813_v13, %v1726_v58  ;;  %v946_v17 = vadd.f32 %v909_v10, %v908_v1 }
 0x1cd   : > { %v815_v18 = vpop.f32.mrf.mxu1 }
 0x1ce   : > { %v911_v19 = vmul.f32 %v1740_v7, %v867_v15  ;;  %v868_v20 = vmax.f32 %v814_v16, 0.0  ;;  %v816_v62 = vadd.f32 %v815_v18, %v1729_v3  ;;  %947 = vadd.xlane.f32.xlu0 %v946_v17 }
 0x1cf   : > { %v817_v21 = vpop.f32.mrf.mxu1 }
 0x1d0   : > { %v912_v22 = vmul.f32 %v1737_v6, %v868_v20  ;;  %v869_v23 = vmax.f32 %v816_v62, 0.0  ;;  %v818_v24 = vadd.f32 %v817_v21, %v1726_v58  ;;  %v949_v25 = vadd.f32 %v911_v19, %v910_v14 }
 0x1d1   : > { %v819_v26 = vpop.f32.mrf.mxu1 }
 0x1d2   : > { %v913_v27 = vmul.f32 %v1740_v7, %v869_v23  ;;  %v870_v28 = vmax.f32 %v818_v24, 0.0  ;;  %v820_v29 = vadd.f32 %v819_v26, %v1729_v3  ;;  %950 = vadd.xlane.f32.xlu0 %v949_v25 }
 0x1d3   : > { %v823_v30 = vpop.f32.mrf.mxu1 }
 0x1d4   : > { %v914_v31 = vmul.f32 %v1737_v6, %v870_v28  ;;  %v871_v32 = vmax.f32 %v820_v29, 0.0  ;;  %v824_v33 = vadd.f32 %v823_v30, %v1726_v58  ;;  %v952_v34 = vadd.f32 %v913_v27, %v912_v22 }
 0x1d5   : > { %v825_v35 = vpop.f32.mrf.mxu1 }
 0x1d6   : > { %v915_v36 = vmul.f32 %v1740_v7, %v871_v32  ;;  %v872_v37 = vmax.f32 %v824_v33, 0.0  ;;  %v826_v38 = vadd.f32 %v825_v35, %v1729_v3  ;;  %953 = vadd.xlane.f32.xlu0 %v952_v34 }
 0x1d7   : > { %v827_v39 = vpop.f32.mrf.mxu1 }
 0x1d8   : > { %v916_v40 = vmul.f32 %v1737_v6, %v872_v37  ;;  %v873_v41 = vmax.f32 %v826_v38, 0.0  ;;  %v828_v42 = vadd.f32 %v827_v39, %v1726_v58  ;;  %v955_v43 = vadd.f32 %v915_v36, %v914_v31 }
 0x1d9   : > { %v829_v45 = vpop.f32.mrf.mxu1 }
 0x1da   : > { %v917_v46 = vmul.f32 %v1740_v7, %v873_v41  ;;  %v874_v47 = vmax.f32 %v828_v42, 0.0  ;;  %v830_v48 = vadd.f32 %v829_v45, %v1729_v3  ;;  %956 = vadd.xlane.f32.xlu0 %v955_v43 }
 0x1db   : > { %v833_v49 = vpop.f32.mrf.mxu1  ;;  %979 = vperm.xlu1 %1322, %v976_v44  }
 0x1dc   : > { %v918_v50 = vmul.f32 %v1737_v6, %v874_v47  ;;  %v875_v51 = vmax.f32 %v830_v48, 0.0  ;;  %v834_v52 = vadd.f32 %v833_v49, %v1726_v58  ;;  %v958_v53 = vadd.f32 %v917_v46, %v916_v40 }
 0x1dd   : > { %v835_v54 = vpop.f32.mrf.mxu1 }
 0x1de   : > { %v919_v55 = vmul.f32 %v1740_v7, %v875_v51  ;;  %v876_v56 = vmax.f32 %v834_v52, 0.0  ;;  %v836_v57 = vadd.f32 %v835_v54, %v1729_v3  ;;  %959 = vadd.xlane.f32.xlu0 %v958_v53 }
 0x1df   : > { %v837_v59 = vpop.f32.mrf.mxu1 }
 0x1e0   : > { %v920_v2 = vmul.f32 %v1737_v6, %v876_v56  ;;  %v877_v0 = vmax.f32 %v836_v57, 0.0  ;;  %v838_v1 = vadd.f32 %v837_v59, %v1726_v58  ;;  %v961_v4 = vadd.f32 %v919_v55, %v918_v50 }
 0x1e1   : > { %v839_v5 = vpop.f32.mrf.mxu1 }
 0x1e2   : > { %v921_v8 = vmul.f32 %v1740_v7, %v877_v0  ;;  %v878_v9 = vmax.f32 %v838_v1, 0.0  ;;  %v840_v10 = vadd.f32 %v839_v5, %v1729_v3 }
 0x1e3   : > { %v843_v11 = vpop.f32.mrf.mxu1 }
 0x1e4   : > { %v922_v12 = vmul.f32 %v1737_v6, %v878_v9  ;;  %v879_v13 = vmax.f32 %v840_v10, 0.0  ;;  %v844_v14 = vadd.f32 %v843_v11, %v1726_v58  ;;  %v964_v15 = vadd.f32 %v921_v8, %v920_v2 }
 0x1e5   : > { %v845_v16 = vpop.f32.mrf.mxu1 }
 0x1e6   : > { %v923_v17 = vmul.f32 %v1740_v7, %v879_v13  ;;  %v880_v18 = vmax.f32 %v844_v14, 0.0  ;;  %v846_v19 = vadd.f32 %v845_v16, %v1729_v3  ;;  %965 = vadd.xlane.f32.xlu0 %v964_v15 }
 0x1e7   : > { %v847_v20 = vpop.f32.mrf.mxu1 }
 0x1e8   : > { %v924_v62 = vmul.f32 %v1737_v6, %v880_v18  ;;  %v881_v21 = vmax.f32 %v846_v19, 0.0  ;;  %v848_v22 = vadd.f32 %v847_v20, %v1726_v58  ;;  %v967_v23 = vadd.f32 %v923_v17, %v922_v12 }
 0x1e9   : > { %v849_v24 = vpop.f32.mrf.mxu1 }
 0x1ea   : > { %v925_v25 = vmul.f32 %v1740_v7, %v881_v21  ;;  %v882_v26 = vmax.f32 %v848_v22, 0.0  ;;  %v850_v27 = vadd.f32 %v849_v24, %v1729_v3  ;;  %968 = vadd.xlane.f32.xlu0 %v967_v23  ;;  %v1805_v3 = vand.u32 127, %v329_v60 }
 0x1ec   : > { %v926_v28 = vmul.f32 %v1737_v6, %v882_v26  ;;  %v883_v29 = vmax.f32 %v850_v27, 0.0  ;;  %v970_v30 = vadd.f32 %v925_v25, %v924_v62  ;;  %v1031_v42 = vadd.s32 4294967280, %v1805_v3 }
 0x1ed   : > { %v1022_v46 = vsub.s32 %v1805_v3, %v1673_v61  ;;  %v1038_v50 = vadd.s32 4294967272, %v1805_v3  ;;  %v1045_v53 = vadd.s32 4294967264, %v1805_v3  ;;  %v1052_v59 = vadd.s32 4294967256, %v1805_v3 }
 0x1ee   : > { %v927_v31 = vmul.f32 %v1740_v7, %v883_v29  ;;  %971 = vadd.xlane.f32.xlu0 %v970_v30  ;;  %v1024_v7 = vadd.s32 4294967288, %v1805_v3  ;;  %v1034_v48 = vsub.s32 %v1031_v42, %v1673_v61  ;;  %v1059_v5 = vadd.s32 4294967248, %v1805_v3 }
 0x1ef   : > { %v1041_v56 = vsub.s32 %v1038_v50, %v1673_v61  ;;  %v1048_v1 = vsub.s32 %v1045_v53, %v1673_v61  ;;  %v1055_v10 = vsub.s32 %v1052_v59, %v1673_v61  ;;  %v1066_v14 = vadd.s32 4294967240, %v1805_v3 }
 0x1f0   : > { %v973_v32 = vadd.f32 %v927_v31, %v926_v28  ;;  %v1027_v60 = vsub.s32 %v1024_v7, %v1673_v61  ;;  %v1062_v13 = vsub.s32 %v1059_v5, %v1673_v61  ;;  %v1073_v17 = vadd.s32 4294967232, %v1805_v3 }
 0x1f1   : > { %v1080_v19 = vadd.s32 4294967224, %v1805_v3  ;;  %v1087_v20 = vadd.s32 4294967216, %v1805_v3  ;;  %v1069_v21 = vsub.s32 %v1066_v14, %v1673_v61  ;;  %v1094_v29 = vadd.s32 4294967208, %v1805_v3 }
 0x1f2   : > { %974 = vadd.xlane.f32.xlu0 %v973_v32  ;;  %v1076_v24 = vsub.s32 %v1073_v17, %v1673_v61 }
 0x1f3   : > { %v1083_v27 = vsub.s32 %v1080_v19, %v1673_v61  ;;  %v1090_v31 = vsub.s32 %v1087_v20, %v1673_v61 }
 0x1ff   : > { %962 = vadd.xlane.f32.xlu1 %v961_v4 }
 0x23f   : > { %v930_v33 = vpop.xlane.xlu0 %929 }
 0x243   : > { %v933_v58 = vpop.xlane.xlu0 %932 }
 0x247   : > { %v936_v34 = vpop.xlane.xlu1 %935 }
 0x24b   : > { %v939_v37 = vpop.xlane.xlu1 %938 }
 0x24f   : > { %v942_v35 = vpop.xlane.xlu0 %941 }
 0x253   : > { %v945_v38 = vpop.xlane.xlu1 %944 }
 0x257   : > { %v948_v36 = vpop.xlane.xlu0 %947  ;;  %v980_v6 = vpop.permute.xlu1 %979 }
 0x258   : > { %v1808_v41 = vrot.slane %v980_v6, %v1679_v63  ;;  %v1097_v6 = vsub.s32 %v1094_v29, %v1673_v61 }
 0x25a   : > { %v986_v44 = vadd.f32 %v1808_v41, %v930_v33  ;;  %v987_v45 = vadd.f32 %v1808_v41, %v933_v58  ;;  %v988_v47 = vadd.f32 %v1808_v41, %v936_v34  ;;  %v989_v54 = vadd.f32 %v1808_v41, %v939_v37 }
 0x25b   : > { %v951_v39 = vpop.xlane.xlu0 %950  ;;  %v990_v2 = vadd.f32 %v1808_v41, %v942_v35  ;;  %v991_v8 = vadd.f32 %v1808_v41, %v945_v38  ;;  %v992_v16 = vadd.f32 %v1808_v41, %v948_v36  ;;  %v1101_v33 = vadd.s32 4294967200, %v1805_v3 }
 0x25c   : > { %v1023_v63 = vrot.slane %v986_v44, %v1022_v46  ;;  %v1028_v49 = vrot.slane %v987_v45, %v1027_v60  ;;  %v1035_v52 = vrot.slane %v988_v47, %v1034_v48  ;;  %v1042_v4 = vrot.slane %v989_v54, %v1041_v56 }
 0x25d   : > { %v1049_v11 = vrot.slane %v990_v2, %v1048_v1  ;;  %v1056_v18 = vrot.slane %v991_v8, %v1055_v10  ;;  %v993_v22 = vadd.f32 %v1808_v41, %v951_v39  ;;  %v1063_v23 = vrot.slane %v992_v16, %v1062_v13 }
 0x25e   : > { %v1030_v55 = vsel %vm1029_vm1, %v1028_v49, %v1023_v63  ;;  %v1108_v34 = vadd.s32 4294967192, %v1805_v3  ;;  %v1115_v35 = vadd.s32 4294967184, %v1805_v3  ;;  %v1122_v37 = vadd.s32 4294967176, %v1805_v3 }
 0x25f   : > { %v954_v40 = vpop.xlane.xlu0 %953  ;;  %v1037_v0 = vsel %vm1036_vm2, %v1035_v52, %v1030_v55  ;;  %v1070_v58 = vrot.slane %v993_v22, %v1069_v21  ;;  %v1104_v7 = vsub.s32 %v1101_v33, %v1673_v61 }
 0x260   : > { %v1044_v9 = vsel %vm1043_vm3, %v1042_v4, %v1037_v0  ;;  %v994_v25 = vadd.f32 %v1808_v41, %v954_v40  ;;  %v1111_v45 = vsub.s32 %v1108_v34, %v1673_v61  ;;  %v1118_v3 = vsub.s32 %v1115_v35, %v1673_v61 }
 0x261   : > { %v1051_v15 = vsel %vm1050_vm4, %v1049_v11, %v1044_v9  ;;  %v1125_v63 = vsub.s32 %v1122_v37, %v1673_v61 }
 0x262   : > { %v1058_v62 = vsel %vm1057_vm5, %v1056_v18, %v1051_v15  ;;  %v1077_v36 = vrot.slane %v994_v25, %v1076_v24 }
 0x263   : > { %v957_v43 = vpop.xlane.xlu0 %956  ;;  %v1065_v30 = vsel %vm1064_vm6, %v1063_v23, %v1058_v62 }
 0x264   : > { %v995_v28 = vadd.f32 %v1808_v41, %v957_v43  ;;  %v1072_v38 = vsel %vm1071_vm7, %v1070_v58, %v1065_v30 }
 0x265   : > { %v1079_v47 = vsel %vm1078_vm8, %v1077_v36, %v1072_v38 }
 0x266   : > { %v1084_v39 = vrot.slane %v995_v28, %v1083_v27 }
 0x267   : > { %v960_v51 = vpop.xlane.xlu0 %959 }
 0x268   : > { %v996_v32 = vadd.f32 %v1808_v41, %v960_v51  ;;  %v1086_v49 = vsel %vm1085_vm9, %v1084_v39, %v1079_v47 }
 0x26a   : > { %v1091_v40 = vrot.slane %v996_v32, %v1090_v31 }
 0x26c   : > { %v1093_v52 = vsel %vm1092_vm10, %v1091_v40, %v1086_v49 }
 0x26f   : > { %v966_v57 = vpop.xlane.xlu0 %965 }
 0x270   : > { %v998_v42 = vadd.f32 %v1808_v41, %v966_v57 }
 0x272   : > { %v1105_v53 = vrot.slane %v998_v42, %v1104_v7 }
 0x273   : > { %v969_v12 = vpop.xlane.xlu0 %968 }
 0x274   : > { %v999_v46 = vadd.f32 %v1808_v41, %v969_v12 }
 0x276   : > { %v1112_v54 = vrot.slane %v999_v46, %v1111_v45 }
 0x277   : > { %v972_v26 = vpop.xlane.xlu0 %971 }
 0x278   : > { %v1000_v48 = vadd.f32 %v1808_v41, %v972_v26 }
 0x27a   : > { %v1119_v61 = vrot.slane %v1000_v48, %v1118_v3 }
 0x27b   : > { %v975_v43 = vpop.xlane.xlu0 %974 }
 0x27c   : > { %v1001_v50 = vadd.f32 %v1808_v41, %v975_v43 }
 0x27e   : > { %v1126_v57 = vrot.slane %v1001_v50, %v1125_v63 }
 0x288   : > { %v963_v44 = vpop.xlane.xlu1 %962 }
 0x289   : > { %v997_v60 = vadd.f32 %v1808_v41, %v963_v44 }
 0x28b   : > { %v1098_v51 = vrot.slane %v997_v60, %v1097_v6 }
 0x28d   : > { %v1100_v55 = vsel %vm1099_vm11, %v1098_v51, %v1093_v52 }
 0x28e   : > { %v1107_v56 = vsel %vm1106_vm12, %v1105_v53, %v1100_v55 }
 0x28f   : > { %v1114_v41 = vsel %vm1113_vm13, %v1112_v54, %v1107_v56 }
 0x290   : > { %v1121_v59 = vsel %vm1120_vm14, %v1119_v61, %v1114_v41 }
 0x291   : > { %v1128_v2 = vsel %vm1127_vm15, %v1126_v57, %v1121_v59 }
 0x292   : > { %1130 = vst [vmem:[%s285_s23] sm:$0x1] %v1128_v2 }
 0x293   : > { %1388 = shalt.err (!%p1385_p3)
}
 0x294   : > { %s1389_s16 = scalar_lea.hbm %s1868_s6, 16  ;;  %s1393_s20 = scalar_lea.hbm %s1912_s7, 32 }
 0x295   : > { %p1390_p4 = scmp.ne.s32.totalorder %s1868_s6, %s1389_s16  ;;  %p1394_p9 = scmp.lt.s32.totalorder %s1868_s6, %s1912_s7 }
 0x296   : > { %p1395_p10 = scmp.lt.s32.totalorder %s1393_s20, %s1389_s16 }
 0x297   : > { %p1391_p7 = pnand %p1390_p4, %p1517_p5 }
 0x298   : > { %p1396_p11 = por %p1395_p10, %p1394_p9 }
 0x299   : > { %p1392_p8 = pneg %p1391_p7 }
 0x29b   : > { %p1397_p12 = pnand %p1396_p11, %p1392_p8 }
 0x29d   : > { %1400 = shalt.err (!%p1397_p12)
}
 0x29e   : > { %1282 = dma.vmem_to_hbm [thread:$0]  (%p1517_p5), %s1145_s24, 16, %s1868_s6, %s1132_s30  }
 0x29f PF: > { %p1288_p13 = scmp.ge.s32.totalorder %s1435_s29, 2  ;;  %s1156_s23 = sand.u32 1, %s1423_s26  }
 0x2a0   : > { %s1157_s10 = scalar_lea.sflag [#allocation4], %s1156_s23 }
 0x2a1   : > { %p1285_p0 = pnand %p1288_p13, %p1521_p6 }
 0x2a3   : > { %p1286_p1 = pneg %p1285_p0 }
 0x2a5   : > { %1418 = dma.done.wait (%p1286_p1), %s1157_s10, 16  }
 0x2a6   : > { %1420 = vsyncadd (%p1286_p1), %s1157_s10, 4294967280  ;;  %p19_p2 = scmp.ge.s32.totalorder %s1505_s8, 4   ;;  %s1915_s26 = smov %s1427_s27 }
 0x2a7   : > { %s1916_s27 = smov %s1431_s28  ;;  %s1917_s28 = smov %s1515_s11 }
 0x2a8   : > { %s1918_s29 = smov %s1505_s8  ;;  %21 = sbr.rel (!%p19_p2) target bundleno = 6 (0x6), region = 83 }
 0x2ad   :  { %1161 = vsyncpa [#allocation4], 1 }
 0x2ae   :  { %1163 = vsyncpa [#allocation4 + $0x1], 1 }

</bundles_post_ra>
